<compile_context>
chip_gen: v6e
topology: v6e:2x2x1
jax: 0.10.0
libtpu: 0.0.40
codegen_flags: <defaults>
</compile_context>

<pallas_src>
import functools

import jax
import jax.numpy as jnp
from jax.experimental import pallas as pl
from jax.experimental.pallas import tpu as pltpu

LAM = 0.66


def _round_up(x, m):
    return -(-x // m) * m


def _choose_tile_rows(b, c, max_tile_rows=512):
    """Pick a batch-tile height: multiple of 8, tile bytes <= ~2 MiB."""
    b8 = _round_up(b, 8)
    tm = min(max_tile_rows, 512)
    tm = max(8, (tm // 8) * 8)
    while tm > 8 and tm * c * 4 > (2 << 20):
        tm //= 2
    return max(8, min(tm, b8))


def _loss_kernel(ep_ref, e_ref, av_ref, out_ref, acc_ref, *, inv_b, lam):
    i = pl.program_id(0)

    @pl.when(i == 0)
    def _init():
        acc_ref[...] = jnp.zeros_like(acc_ref)

    # --- steady state: accumulate KL pointwise terms (no reductions here) ---
    ep = ep_ref[...].astype(jnp.float32)   # log-probabilities (input)
    e = e_ref[...].astype(jnp.float32)     # probabilities (target)
    tiny = jnp.float32(jnp.finfo(jnp.float32).tiny)
    # e == 0 (including batch-padding rows) contributes exactly 0.
    acc_ref[...] += e * (jnp.log(jnp.maximum(e, tiny)) - ep)

    # --- epilogue: single reduction + MSEs + weighted combine ---
    @pl.when(i == pl.num_programs(0) - 1)
    def _finalize():
        inv_b_f = jnp.float32(inv_b)
        lam_f = jnp.float32(lam)

        kld = jnp.sum(acc_ref[...]) * inv_b_f            # KLDiv 'batchmean'

        av = av_ref[...].astype(jnp.float32)             # (4, B_lanes), zero-padded
        da = av[0:1, :] - av[1:2, :]                     # arousal_pred - arousal
        dv = av[2:3, :] - av[3:4, :]                     # valence_pred - valence
        mse_a = jnp.sum(da * da) * inv_b_f               # MSE mean over B elements
        mse_v = jnp.sum(dv * dv) * inv_b_f

        out_ref[0, 0] = lam_f * kld + (jnp.float32(1.0) - lam_f) * (mse_a + mse_v)


def doraemiso_loss(emotion_pred, emotion, arousal_pred, arousal,
                   valence_pred, valence, *, lam=LAM, max_tile_rows=512):
    """Pallas TPU implementation of DoRaeMiSoLoss.forward. Returns a scalar f32."""
    b, c = emotion_pred.shape

    tm = _choose_tile_rows(b, c, max_tile_rows)
    bp = _round_up(b, tm)
    nb = bp // tm

    ep = emotion_pred.astype(jnp.float32)
    e = emotion.astype(jnp.float32)
    if bp != b:
        pad = ((0, bp - b), (0, 0))
        ep = jnp.pad(ep, pad)
        e = jnp.pad(e, pad)          # zero targets -> zero KL contribution

    # Pack the four (B, 1) tensors into one lane-dense (4, Bl) f32 block.
    bl = _round_up(b, 128)

    def _flat(x):
        x = jnp.reshape(x.astype(jnp.float32), (-1,))
        return jnp.pad(x, (0, bl - b))

    av = jnp.stack(
        [_flat(arousal_pred), _flat(arousal), _flat(valence_pred), _flat(valence)],
        axis=0)                      # (4, bl); padded lanes are zero

    kernel = functools.partial(_loss_kernel, inv_b=1.0 / float(b), lam=float(lam))

    out = pl.pallas_call(
        kernel,
        out_shape=jax.ShapeDtypeStruct((1, 1), jnp.float32),
        grid_spec=pltpu.PrefetchScalarGridSpec(
            num_scalar_prefetch=0,
            grid=(nb,),
            in_specs=[
                pl.BlockSpec((tm, c), lambda i: (i, 0)),     # emotion_pred tile
                pl.BlockSpec((tm, c), lambda i: (i, 0)),     # emotion tile
                pl.BlockSpec((4, bl), lambda i: (0, 0)),     # packed arousal/valence
            ],
            out_specs=pl.BlockSpec(memory_space=pltpu.SMEM),
            scratch_shapes=[pltpu.VMEM((tm, c), jnp.float32)],  # KL partial sums
        ),
        compiler_params=pltpu.CompilerParams(
            dimension_semantics=("arbitrary",),   # resident accumulator axis
        ),
    )(ep, e, av)
    return out[0, 0]


def _reference(emotion_pred, emotion, arousal_pred, arousal, valence_pred, valence,
               lam=LAM):
    # Pure-JAX reference mirroring PyTorch semantics.
    b = emotion_pred.shape[0]
    safe_e = jnp.where(emotion > 0, emotion, 1.0)
    kld = jnp.sum(jnp.where(emotion > 0,
                            emotion * (jnp.log(safe_e) - emotion_pred), 0.0)) / b
    mse_a = jnp.mean((arousal_pred - arousal) ** 2)
    mse_v = jnp.mean((valence_pred - valence) ** 2)
    return lam * kld + (1 - lam) * mse_a + (1 - lam) * mse_v


def _make_inputs(key, b, c):
    k1, k2, k3, k4, k5, k6 = jax.random.split(key, 6)
    emotion_pred = jax.nn.log_softmax(
        jax.random.normal(k1, (b, c), dtype=jnp.float32), axis=-1)
    emotion = jax.nn.softmax(
        jax.random.normal(k2, (b, c), dtype=jnp.float32), axis=-1)
    arousal_pred = jax.random.normal(k3, (b, 1), dtype=jnp.float32)
    arousal = jax.random.normal(k4, (b, 1), dtype=jnp.float32)
    valence_pred = jax.random.normal(k5, (b, 1), dtype=jnp.float32)
    valence = jax.random.normal(k6, (b, 1), dtype=jnp.float32)
    return emotion_pred, emotion, arousal_pred, arousal, valence_pred, valence


if __name__ == "__main__":
    key = jax.random.PRNGKey(0)
    k_a, k_b = jax.random.split(key, 2)

    # Case 1: tiny shapes (single grid step).
    args1 = _make_inputs(k_a, 8, 8)
    loss1 = doraemiso_loss(*args1)
    jax.block_until_ready(loss1)
    ref1 = _reference(*args1)
    assert jnp.allclose(loss1, ref1, atol=1e-5, rtol=1e-5), (loss1, ref1)

    # Case 2: batch not a multiple of the tile -> exercises grid accumulation
    # and zero-padding (forced small tile so nb > 1).
    args2 = _make_inputs(k_b, 20, 8)
    loss2 = doraemiso_loss(*args2, max_tile_rows=8)
    jax.block_until_ready(loss2)
    ref2 = _reference(*args2)
    assert jnp.allclose(loss2, ref2, atol=1e-5, rtol=1e-5), (loss2, ref2)

    print("KERNEL_OK")
</pallas_src>

<mosaic_0001>
module attributes {stable_mosaic.version = 11 : i64} {
  func.func @_loss_kernel(%arg0: i32, %arg1: memref<8x8xf32, #tpu.memory_space<vmem>>, %arg2: memref<8x8xf32, #tpu.memory_space<vmem>>, %arg3: memref<4x128xf32, #tpu.memory_space<vmem>>, %arg4: memref<1x1xf32, #tpu.memory_space<smem>>, %arg5: memref<8x8xf32, #tpu.memory_space<vmem>>) attributes {dimension_semantics = [#tpu.dimension_semantics<arbitrary>], iteration_bounds = array<i64: 1>, scalar_prefetch = 0 : i64, scratch_operands = 1 : i64, tpu.core_type = #tpu.core_type<tc>, window_params = [{transform_indices = @transform_0, window_bounds = array<i64: 8, 8>}, {transform_indices = @transform_1, window_bounds = array<i64: 8, 8>}, {pipeline_mode = #tpu.pipeline_mode<synchronous>, transform_indices = @transform_2, window_bounds = array<i64: 4, 128>}, {transform_indices = @transform_3, window_bounds = array<i64: 1, 1>}]} {
    %c0_i32 = arith.constant 0 : i32
    %0 = arith.cmpi eq, %arg0, %c0_i32 : i32
    %1 = arith.extui %0 : i1 to i32
    %c0_i32_0 = arith.constant 0 : i32
    %2 = arith.cmpi ne, %1, %c0_i32_0 : i32
    scf.if %2 {
      %cst_10 = arith.constant 0.000000e+00 : f32
      %16 = vector.broadcast %cst_10 : f32 to vector<8x8xf32>
      %c0_11 = arith.constant 0 : index
      %c0_12 = arith.constant 0 : index
      %17 = vector.load %arg5[%c0_11, %c0_12] : memref<8x8xf32, #tpu.memory_space<vmem>>, vector<8x8xf32>
      tpu.vector_store %arg5[%c0_11, %c0_12], %16 {strides = array<i32>} : memref<8x8xf32, #tpu.memory_space<vmem>>, vector<8x8xf32>,
    } else {
    }
    %c0 = arith.constant 0 : index
    %c0_1 = arith.constant 0 : index
    %3 = vector.load %arg1[%c0, %c0_1] : memref<8x8xf32, #tpu.memory_space<vmem>>, vector<8x8xf32>
    %c0_2 = arith.constant 0 : index
    %c0_3 = arith.constant 0 : index
    %4 = vector.load %arg2[%c0_2, %c0_3] : memref<8x8xf32, #tpu.memory_space<vmem>>, vector<8x8xf32>
    %c0_4 = arith.constant 0 : index
    %c0_5 = arith.constant 0 : index
    %5 = vector.load %arg5[%c0_4, %c0_5] : memref<8x8xf32, #tpu.memory_space<vmem>>, vector<8x8xf32>
    %cst = arith.constant 1.17549435E-38 : f32
    %6 = vector.broadcast %cst : f32 to vector<8x8xf32>
    %7 = arith.maximumf %4, %6 : vector<8x8xf32>
    %8 = math.log %7 : vector<8x8xf32>
    %9 = arith.subf %8, %3 : vector<8x8xf32>
    %10 = arith.mulf %4, %9 : vector<8x8xf32>
    %11 = arith.addf %5, %10 : vector<8x8xf32>
    %c0_6 = arith.constant 0 : index
    %c0_7 = arith.constant 0 : index
    %12 = vector.load %arg5[%c0_6, %c0_7] : memref<8x8xf32, #tpu.memory_space<vmem>>, vector<8x8xf32>
    tpu.vector_store %arg5[%c0_6, %c0_7], %11 {strides = array<i32>} : memref<8x8xf32, #tpu.memory_space<vmem>>, vector<8x8xf32>,
    %c0_i32_8 = arith.constant 0 : i32
    %13 = arith.cmpi eq, %arg0, %c0_i32_8 : i32
    %14 = arith.extui %13 : i1 to i32
    %c0_i32_9 = arith.constant 0 : i32
    %15 = arith.cmpi ne, %14, %c0_i32_9 : i32
    scf.if %15 {
      %c0_10 = arith.constant 0 : index
      %c0_11 = arith.constant 0 : index
      %16 = vector.load %arg5[%c0_10, %c0_11] : memref<8x8xf32, #tpu.memory_space<vmem>>, vector<8x8xf32>
      %17 = vector.shape_cast %16 : vector<8x8xf32> to vector<1x8x8xf32>
      %cst_12 = arith.constant dense<0.000000e+00> : vector<1xf32>
      %18 = vector.multi_reduction <add>, %17, %cst_12 [1, 2] : vector<1x8x8xf32> to vector<1xf32>
      %19 = vector.shape_cast %18 : vector<1xf32> to vector<1x1x1xf32>
      %20 = vector.extract %19[0, 0, 0] : f32 from vector<1x1x1xf32>
      %cst_13 = arith.constant 1.250000e-01 : f32
      %21 = arith.mulf %20, %cst_13 : f32
      %c0_14 = arith.constant 0 : index
      %c0_15 = arith.constant 0 : index
      %22 = vector.load %arg3[%c0_14, %c0_15] : memref<4x128xf32, #tpu.memory_space<vmem>>, vector<4x128xf32>
      %23 = vector.extract_strided_slice %22 {offsets = [0, 0], sizes = [1, 128], strides = [1, 1]} : vector<4x128xf32> to vector<1x128xf32>
      %24 = vector.extract_strided_slice %22 {offsets = [1, 0], sizes = [1, 128], strides = [1, 1]} : vector<4x128xf32> to vector<1x128xf32>
      %25 = arith.subf %23, %24 : vector<1x128xf32>
      %26 = vector.extract_strided_slice %22 {offsets = [2, 0], sizes = [1, 128], strides = [1, 1]} : vector<4x128xf32> to vector<1x128xf32>
      %27 = vector.extract_strided_slice %22 {offsets = [3, 0], sizes = [1, 128], strides = [1, 1]} : vector<4x128xf32> to vector<1x128xf32>
      %28 = arith.subf %26, %27 : vector<1x128xf32>
      %29 = arith.mulf %25, %25 : vector<1x128xf32>
      %30 = vector.shape_cast %29 : vector<1x128xf32> to vector<1x1x128xf32>
      %cst_16 = arith.constant dense<0.000000e+00> : vector<1xf32>
      %31 = vector.multi_reduction <add>, %30, %cst_16 [1, 2] : vector<1x1x128xf32> to vector<1xf32>
      %32 = vector.shape_cast %31 : vector<1xf32> to vector<1x1x1xf32>
      %33 = vector.extract %32[0, 0, 0] : f32 from vector<1x1x1xf32>
      %cst_17 = arith.constant 1.250000e-01 : f32
      %34 = arith.mulf %33, %cst_17 : f32
      %35 = arith.mulf %28, %28 : vector<1x128xf32>
      %36 = vector.shape_cast %35 : vector<1x128xf32> to vector<1x1x128xf32>
      %cst_18 = arith.constant dense<0.000000e+00> : vector<1xf32>
      %37 = vector.multi_reduction <add>, %36, %cst_18 [1, 2] : vector<1x1x128xf32> to vector<1xf32>
      %38 = vector.shape_cast %37 : vector<1xf32> to vector<1x1x1xf32>
      %39 = vector.extract %38[0, 0, 0] : f32 from vector<1x1x1xf32>
      %cst_19 = arith.constant 1.250000e-01 : f32
      %40 = arith.mulf %39, %cst_19 : f32
      %cst_20 = arith.constant 6.600000e-01 : f32
      %41 = arith.mulf %cst_20, %21 : f32
      %cst_21 = arith.constant 1.000000e+00 : f32
      %cst_22 = arith.constant 6.600000e-01 : f32
      %42 = arith.subf %cst_21, %cst_22 : f32
      %43 = arith.addf %34, %40 : f32
      %44 = arith.mulf %42, %43 : f32
      %45 = arith.addf %41, %44 : f32
      %c0_23 = arith.constant 0 : index
      %c0_24 = arith.constant 0 : index
      %46 = memref.load %arg4[%c0_23, %c0_24] : memref<1x1xf32, #tpu.memory_space<smem>>
      memref.store %45, %arg4[%c0_23, %c0_24] : memref<1x1xf32, #tpu.memory_space<smem>>
    } else {
    }
    return
  }
  func.func @transform_0(%arg0: i32) -> (i32, i32) {
    %c0_i32 = arith.constant 0 : i32
    %c0_i32_0 = arith.constant 0 : i32
    return %arg0, %c0_i32 : i32, i32
  }
  func.func @transform_1(%arg0: i32) -> (i32, i32) {
    %c0_i32 = arith.constant 0 : i32
    %c0_i32_0 = arith.constant 0 : i32
    return %arg0, %c0_i32 : i32, i32
  }
  func.func @transform_2(%arg0: i32) -> (i32, i32) {
    %c0_i32 = arith.constant 0 : i32
    %c0_i32_0 = arith.constant 0 : i32
    %c0_i32_1 = arith.constant 0 : i32
    return %c0_i32, %c0_i32_0 : i32, i32
  }
  func.func @transform_3(%arg0: i32) -> (i32, i32) {
    %c0_i32 = arith.constant 0 : i32
    %c0_i32_0 = arith.constant 0 : i32
    %c0_i32_1 = arith.constant 0 : i32
    return %c0_i32, %c0_i32_0 : i32, i32
  }
}

</mosaic_0001>

<bundles_post_ra>
// kernel: tpu_custom_call.1
= control target key start
LH: loop header
LB: loop body
LE: loop exit
PB: predicated region body
PF: predicated region fallthrough
CT: control target
= control target key end

     0   :  { %8 = vsyncpa [#allocation4], 0  ;;  %s262_s0 = inlined_call_operand.hbm [shape: f32[8,8], index: 0, kind: input, shape index: {}]   ;;  %s263_s1 = inlined_call_operand.hbm [shape: f32[8,8], index: 1, kind: input, shape index: {}]   ;;  %s264_s2 = inlined_call_operand.hbm [shape: f32[4,128], index: 2, kind: input, shape index: {}]   ;;  %s265_s3 = inlined_call_operand.hbm [shape: f32[1,1], index: 3, kind: output, shape index: {}]  }
   0x1   :  { %9 = vsyncpa [#allocation7], 0 }
   0x2   :  { %10 = vsyncpa [#allocation5], 0  ;;  %s222_s12 = smov [#allocation6]   ;;  %s223_s14 = smov [#allocation3]  }
   0x3   :  { %s27_s13 = sshll.u32 %s222_s12, 4  ;;  %s17_s15 = sshll.u32 %s223_s14, 4  ;;  %s28_s13 = int_to_ptr.vmem [resolvable:$true] %s27_s13  ;;  %s18_s15 = int_to_ptr.vmem [resolvable:$true] %s17_s15 }
   0x4   :  { %s156_s16 = scalar_lea.vmem %s28_s13, 128  ;;  %p161_p1 = scmp.lt.s32.totalorder %s28_s13, %s28_s13 }
   0x5   :  { %p157_p0 = scmp.ne.s32.totalorder %s28_s13, %s156_s16  ;;  %p162_p2 = scmp.lt.s32.totalorder %s156_s16, %s156_s16 }
   0x7   :  { %p163_p3 = por %p162_p2, %p161_p1 }
   0x9   :  { %p164_p4 = pnand %p163_p3, %p157_p0 }
   0xb   :  { %167 = shalt.err (!%p164_p4)
}
   0xc   :  { %30 = dma.hbm_to_vmem [thread:$0]  %s263_s1, 128, %s28_s13, [#allocation7]  }
   0xd   :  { %s176_s19 = scalar_lea.vmem %s18_s15, 128  ;;  %p181_p6 = scmp.lt.s32.totalorder %s18_s15, %s18_s15 }
   0xe   :  { %p177_p5 = scmp.ne.s32.totalorder %s18_s15, %s176_s19  ;;  %p182_p7 = scmp.lt.s32.totalorder %s176_s19, %s176_s19 }
  0x10   :  { %p183_p8 = por %p182_p7, %p181_p6 }
  0x12   :  { %p184_p9 = pnand %p183_p8, %p177_p5 }
  0x14   :  { %187 = shalt.err (!%p184_p9)
}
  0x15   :  { %20 = dma.hbm_to_vmem [thread:$0]  %s262_s0, 128, %s18_s15, [#allocation4]  }
  0x16   :  { %s224_s22 = smov [#allocation8]  }
  0x17   :  { %s37_s23 = sshll.u32 %s224_s22, 4  ;;  %s38_s23 = int_to_ptr.vmem [resolvable:$true] %s37_s23 }
  0x18   :  { %s196_s24 = scalar_lea.vmem %s38_s23, 64  ;;  %p201_p11 = scmp.lt.s32.totalorder %s38_s23, %s38_s23 }
  0x19   :  { %p197_p10 = scmp.ne.s32.totalorder %s38_s23, %s196_s24  ;;  %p202_p12 = scmp.lt.s32.totalorder %s196_s24, %s196_s24 }
  0x1b   :  { %p203_p13 = por %p202_p12, %p201_p11 }
  0x1d   :  { %p204_p0 = pnand %p203_p13, %p197_p10 }
  0x1f   :  { %207 = shalt.err (!%p204_p0)
}
  0x20   :  { %40 = dma.hbm_to_vmem [thread:$0]  %s264_s2, 64, %s38_s23, [#allocation7]  }
  0x21   :  { %216 = dma.done.wait [#allocation4], 128  }
  0x22   :  { %217 = vsyncadd [#allocation4], 4294967168 }
  0x23   :  { %218 = dma.done.wait [#allocation7], 192  }
  0x24   :  { %219 = vsyncadd [#allocation7], 4294967104  ;;  %vm54_vm0 = vcmask 64512   ;;  %v225_v0 = vmov 0.0   ;;  %v82_v1 = vld [vmem:[#allocation8] sm:$0xf] }
  0x25   :  { %55 = vst.msk [vmem:[#allocation2] sm:$0xff] %vm54_vm0, %v225_v0  ;;  %v57_v2 = vld [vmem:[#allocation6] sm:$0xff]  ;;  %v84_v3 = vrot.slane %v82_v1, 1  ;;  %vm88_vm1 = vcmask 1040384   ;;  %v56_v10 = vld [vmem:[#allocation3] sm:$0xff]  ;;  %s226_s7 = smov [#allocation9]  }
  0x26   :  { %v59_v4 = vmax.f32 %v57_v2, 1.1754944e-38 }
  0x27   :  { %v86_v5 = vsub.f32 %v82_v1, %v84_v3 }
  0x28   :  { %146 = vlog2.f32 %v59_v4 }
  0x29   :  { %v87_v6 = vmul.f32 %v86_v5, %v86_v5 }
  0x2b   :  { %v101_v7 = vrot.slane %v87_v6, 2  ;;  %v89_v18 = vsel %vm88_vm1, %v87_v6, 0.0 }
  0x2c   :  { %v58_v13 = vld [vmem:[#allocation2] sm:$0xff] }
  0x2d   :  { %v103_v8 = vsel %vm88_vm1, %v101_v7, 0.0 }
  0x2e   :  { %104 = vadd.xlane.f32.xlu1 %v103_v8 }
  0x35   :  { %v147_v9 = vpop.eup %146 }
  0x36   :  { %v61_v11 = vmul.f32 0.6931472, %v147_v9 }
  0x38   :  { %v62_v12 = vsub.f32 %v61_v11, %v56_v10 }
  0x3a   :  { %v63_v14 = vmul.f32 %v62_v12, %v57_v2 }
  0x3c   :  { %v64_v15 = vadd.f32 %v63_v14, %v58_v13 }
  0x3e   :  { %66 = vst.msk [vmem:[#allocation2] sm:$0xff] %vm54_vm0, %v64_v15 }
  0x45   :  { %v70_v16 = vld [vmem:[#allocation2] sm:$0xff] }
  0x46   :  { %v71_v17 = vsel %vm54_vm0, %v70_v16, 0.0 }
  0x47   :  { %72 = vadd.xlane.f32.xlu0 %v71_v17 }
  0x4b   :  { %90 = vadd.xlane.f32.xlu0 %v89_v18 }
  0xb7   :  { %v105_v19 = vpop.xlane.xlu1 %104 }
  0xb8   :  { %v106_v20 = vrot.slane %v105_v19, 4 }
  0xba   :  { %v107_v21 = vadd.f32 %v106_v20, %v105_v19 }
  0xbc   :  { %v108_v25 = vrot.slane %v107_v21, 2 }
  0xbe   :  { %v109_v31 = vadd.f32 %v108_v25, %v107_v21 }
  0xc0   :  { %v110_v36 = vrot.slane %v109_v31, 1 }
  0xc2   :  { %v111_v39 = vadd.f32 %v110_v36, %v109_v31 }
  0xd0   :  { %v73_v22 = vpop.xlane.xlu0 %72 }
  0xd1   :  { %v74_v23 = vrot.slane %v73_v22, 4 }
  0xd3   :  { %v75_v24 = vadd.f32 %v74_v23, %v73_v22 }
  0xd4   :  { %v91_v26 = vpop.xlane.xlu0 %90 }
  0xd5   :  { %v76_v27 = vrot.slane %v75_v24, 2  ;;  %v92_v28 = vrot.slane %v91_v26, 4 }
  0xd7   :  { %v93_v29 = vadd.f32 %v92_v28, %v91_v26  ;;  %v77_v30 = vadd.f32 %v76_v27, %v75_v24 }
  0xd9   :  { %v94_v32 = vrot.slane %v93_v29, 2  ;;  %v78_v33 = vrot.slane %v77_v30, 1 }
  0xdb   :  { %v95_v34 = vadd.f32 %v94_v32, %v93_v29  ;;  %v79_v35 = vadd.f32 %v78_v33, %v77_v30 }
  0xdd   :  { %135 = vpush %v79_v35  ;;  %v96_v37 = vrot.slane %v95_v34, 1 }
  0xdf   :  { %v97_v38 = vadd.f32 %v96_v37, %v95_v34 }
  0xe1   :  { %137 = vpush %v97_v38 }
  0xe2   :  { %139 = vpush %v111_v39 }
 0x10e   :  { %s136_s0 = spop %135 }
 0x10f   :  { %s81_s2 = smul.f32 0.125, %s136_s0 }
 0x111   :  { %s114_s4 = smul.f32 0.66, %s81_s2 }
 0x112   :  { %s138_s26 = spop %137 }
 0x113   :  { %s99_s27 = smul.f32 0.125, %s138_s26  ;;  %s140_s28 = spop %139 }
 0x114   :  { %s113_s29 = smul.f32 0.125, %s140_s28 }
 0x116   :  { %s115_s30 = sadd.f32 %s113_s29, %s99_s27 }
 0x118   :  { %s116_s5 = smul.f32 0.33999997, %s115_s30 }
 0x11a   :  { %s117_s6 = sadd.f32 %s116_s5, %s114_s4 }
 0x11c   :  { %119 = sst [smem:[#allocation9]] %s117_s6 }
 0x11d   :  { %127 = dma.smem_to_hbm %s226_s7, 16, %s265_s3, [#allocation5]  }
 0x11e   :  { %220 = dma.done.wait [#allocation5], 16  }
 0x11f   :  { %221 = vsyncadd [#allocation5], 4294967280 }
 0x120   :  { %131 = sfence }
 0x121   :  { %132 = vsyncpa [#allocation4], 1 }
 0x122   :  { %133 = vsyncpa [#allocation7], 1 }
 0x123   :  { %134 = vsyncpa [#allocation5], 1 }

</bundles_post_ra>
